<compile_context>
chip_gen: v6e
topology: v6e:2x2x1
jax: 0.10.0
libtpu: 0.0.40
codegen_flags: <defaults>
</compile_context>

<pallas_src>
import functools

import jax
import jax.numpy as jnp
from jax.experimental import pallas as pl
from jax.experimental.pallas import tpu as pltpu

_LANE = 128
_SUBLANE = 8
_MAX_TILE_M = 2048                 # ~1 MiB per 128-lane f32 activation buffer
_DEFAULT_SCOPED_VMEM = 16 << 20    # smallest default scoped VMEM limit (v5e)


def _round_up(n, m):
    return ((n + m - 1) // m) * m


def _tpu_info():
    """(num_tensorcores, vmem_capacity_bytes) with conservative fallbacks."""
    n_tc, vmem_cap = 1, 64 << 20   # v7x has the smallest physical VMEM (64 MiB)
    try:
        info = pltpu.get_tpu_info()
        for attr in ("num_tensorcores", "tensorcores_per_chip",
                     "num_cores", "cores_per_chip"):
            v = getattr(info, attr, None)
            if v:
                n_tc = int(v)
                break
        v = getattr(info, "vmem_capacity_bytes", None)
        if v:
            vmem_cap = int(v)
    except Exception:
        pass
    return n_tc, vmem_cap


def _mlp_kernel(n_layers, *refs):
    """Fused MLP: all matmuls + biases + sigmoids in one kernel invocation.

    refs = (x_ref, w0_ref, b0_ref, ..., w{n-1}_ref, b{n-1}_ref, o_ref)
    The whole (small) padded weight stack is resident in VMEM (constant
    index_map); only the batch axis is tiled across the grid.
    """
    x_ref = refs[0]
    o_ref = refs[-1]
    wb = refs[1:-1]

    h = x_ref[...]                                  # f32 activations
    for layer in range(n_layers):
        w = wb[2 * layer][...]
        b = wb[2 * layer + 1][...]
        # K of layer 0 is the unpadded feature dim; Mosaic pads it in-vreg.
        # (Optional bf16 weights are supported: h is cast to w.dtype.)
        h = jnp.dot(h.astype(w.dtype), w, preferred_element_type=jnp.float32) + b
        if layer < n_layers - 1:                    # no activation on the head
            h = jax.nn.sigmoid(h)                   # exp lands on the EUP slot
    o_ref[...] = h.astype(o_ref.dtype)


def _pick_tile_m(batch, n_tc):
    """Generation-aware batch tile: 1 grid step on 1-TC chips, >=n_tc on v7x."""
    b8 = _round_up(max(batch, 1), _SUBLANE)
    if n_tc <= 1:
        return min(_MAX_TILE_M, b8)                 # single grid step (v5e/v6e)
    if b8 <= n_tc * _SUBLANE:
        return _SUBLANE
    return min(_MAX_TILE_M, _round_up(pl.cdiv(b8, n_tc), _SUBLANE))


@functools.partial(jax.jit, static_argnames=("out_dim", "tile_m"))
def _mlp_forward_impl(x, *wb_flat, out_dim, tile_m):
    """Jitted: pad batch -> fused Pallas MLP -> slice real rows/column."""
    B, D = x.shape
    n_layers = len(wb_flat) // 2
    weights = wb_flat[0::2]
    biases = wb_flat[1::2]
    out_pad = weights[-1].shape[1]                  # lane-dense (>=128) head

    grid_m = pl.cdiv(B, tile_m)
    B_pad = grid_m * tile_m
    x_p = jnp.pad(x, ((0, B_pad - B), (0, 0))) if B_pad != B else x

    # x keeps its unpadded feature dim (block last dim == array dim is legal).
    in_specs = [pl.BlockSpec((tile_m, D), lambda i: (i, 0))]
    args = [x_p]
    for w_p, b_p in zip(weights, biases):
        # Whole-array blocks with a constant index_map => fetched once and
        # resident in VMEM across all grid steps.
        # TODO: for very large hidden dims (v7x 64 MiB VMEM) switch to a
        # weight-tiled reduction axis / single-buffered weight blocks.
        in_specs.append(pl.BlockSpec(w_p.shape, lambda i: (0, 0)))
        in_specs.append(pl.BlockSpec(b_p.shape, lambda i: (0, 0)))
        args.extend([w_p, b_p])

    # ---- rough VMEM budget (conservative: everything double-buffered) ----
    wbytes = sum(w.size * w.dtype.itemsize + b.size * b.dtype.itemsize
                 for w, b in zip(weights, biases))
    iobytes = (tile_m * D + tile_m * out_pad) * 4
    vmem_needed = 2 * (wbytes + iobytes)
    compiler_kwargs = dict(dimension_semantics=("parallel",))
    if vmem_needed > _DEFAULT_SCOPED_VMEM:
        _, vmem_cap = _tpu_info()
        compiler_kwargs["vmem_limit_bytes"] = min(
            _round_up(vmem_needed + (8 << 20), 1 << 20),
            max(vmem_cap - (4 << 20), _DEFAULT_SCOPED_VMEM))

    # ---- advisory cost estimate for XLA's scheduler ----
    k_dims = [D] + [w.shape[1] for w in weights[:-1]]
    n_dims = [w.shape[1] for w in weights]
    flops = 2 * B_pad * sum(k * n for k, n in zip(k_dims, n_dims))
    transcendentals = B_pad * sum(n_dims[:-1])      # one exp per sigmoid element
    bytes_accessed = 4 * B_pad * (D + out_pad) + wbytes
    cost = pl.CostEstimate(flops=int(flops),
                           transcendentals=int(transcendentals),
                           bytes_accessed=int(bytes_accessed))

    out_p = pl.pallas_call(
        functools.partial(_mlp_kernel, n_layers),
        out_shape=jax.ShapeDtypeStruct((B_pad, out_pad), jnp.float32),
        grid_spec=pltpu.PrefetchScalarGridSpec(
            num_scalar_prefetch=0,
            grid=(grid_m,),
            in_specs=in_specs,
            out_specs=pl.BlockSpec((tile_m, out_pad), lambda i: (i, 0)),
        ),
        compiler_params=pltpu.CompilerParams(**compiler_kwargs),
        cost_estimate=cost,
    )(*args)
    # Drop batch padding and padded output lanes (real head width = out_dim).
    return out_p[:B, :out_dim]


def mlp_forward(x, padded_params, *, out_dim=1, tile_m=None):
    """Public wrapper: pick a generation-aware tile and call the jitted impl."""
    if tile_m is None:
        n_tc, _ = _tpu_info()
        tile_m = _pick_tile_m(x.shape[0], n_tc)
    tile_m = _round_up(tile_m, _SUBLANE)
    wb_flat = [a for wb in padded_params for a in wb]
    return _mlp_forward_impl(x, *wb_flat, out_dim=out_dim, tile_m=tile_m)


def init_params(key, input_val, hidden_layers):
    """Deterministic PyTorch-style init: U(-1/sqrt(fan_in), 1/sqrt(fan_in))."""
    dims = [input_val] + list(hidden_layers) + [1]
    params = []
    for d_in, d_out in zip(dims[:-1], dims[1:]):
        key, kw, kb = jax.random.split(key, 3)
        bound = 1.0 / jnp.sqrt(jnp.float32(d_in))
        w = jax.random.uniform(kw, (d_in, d_out), jnp.float32, -bound, bound)
        b = jax.random.uniform(kb, (1, d_out), jnp.float32, -bound, bound)
        params.append((w, b))
    return params


def pad_params(params, *, weight_dtype=jnp.float32):
    """Pad every layer's OUTPUT dim (and the next layer's input dim) to 128
    lanes; the first layer's input dim stays unpadded so the input DMA carries
    no padded lanes.  Zero padding is exact (padded weight rows are zero, so
    padded activation lanes -- sigmoid(0)=0.5 -- contribute nothing).
    Called ONCE at init, not per forward call.  Set weight_dtype=jnp.bfloat16
    for the optional reduced-precision MXU path."""
    dims = [params[0][0].shape[0]] + [w.shape[1] for w, _ in params]
    dims_pad = [dims[0]] + [_round_up(d, _LANE) for d in dims[1:]]
    padded = []
    for li, (w, b) in enumerate(params):
        din, dout = w.shape
        w_p = jnp.pad(w, ((0, dims_pad[li] - din), (0, dims_pad[li + 1] - dout)))
        b_p = jnp.pad(b, ((0, 0), (0, dims_pad[li + 1] - dout)))
        padded.append((w_p.astype(weight_dtype), b_p.astype(jnp.float32)))
    return padded


def mlp_reference(x, params):
    """Pure-JAX reference for correctness checking."""
    h = x
    n = len(params)
    for i, (w, b) in enumerate(params):
        h = h @ w + b
        if i < n - 1:
            h = jax.nn.sigmoid(h)
    return h


if __name__ == "__main__":
    # Small shapes consistent with the module: x is (batch, input_val).
    batch = 256
    input_val = 32
    hidden_layers = [32, 16]

    key = jax.random.PRNGKey(0)
    key, kx = jax.random.split(key)
    x = jax.random.normal(kx, (batch, input_val), jnp.float32)
    params = init_params(key, input_val, hidden_layers)
    padded_params = pad_params(params)          # pad once at init, not per call

    out = jax.block_until_ready(mlp_forward(x, padded_params))
    ref = mlp_reference(x, params)
    assert out.shape == (batch, 1), out.shape
    assert jnp.allclose(out, ref, atol=1e-5, rtol=1e-5), "mismatch vs reference"

    # Also exercise a batch that is NOT a multiple of the tile (padding path).
    x_odd = jax.random.normal(key, (batch - 37, input_val), jnp.float32)
    out_odd = jax.block_until_ready(mlp_forward(x_odd, padded_params))
    assert jnp.allclose(out_odd, mlp_reference(x_odd, params),
                        atol=1e-5, rtol=1e-5), "mismatch vs reference (odd batch)"

    print("KERNEL_OK")
</pallas_src>

<mosaic_0001>
module attributes {stable_mosaic.version = 11 : i64} {
  func.func @_mlp_kernel(%arg0: i32, %arg1: memref<256x32xf32, #tpu.memory_space<vmem>>, %arg2: memref<32x128xf32, #tpu.memory_space<vmem>>, %arg3: memref<1x128xf32, #tpu.memory_space<vmem>>, %arg4: memref<128x128xf32, #tpu.memory_space<vmem>>, %arg5: memref<1x128xf32, #tpu.memory_space<vmem>>, %arg6: memref<128x128xf32, #tpu.memory_space<vmem>>, %arg7: memref<1x128xf32, #tpu.memory_space<vmem>>, %arg8: memref<256x128xf32, #tpu.memory_space<vmem>>) attributes {dimension_semantics = [#tpu.dimension_semantics<parallel>], iteration_bounds = array<i64: 1>, scalar_prefetch = 0 : i64, scratch_operands = 0 : i64, tpu.core_type = #tpu.core_type<tc>, window_params = [{transform_indices = @transform_0, window_bounds = array<i64: 256, 32>}, {pipeline_mode = #tpu.pipeline_mode<synchronous>, transform_indices = @transform_1, window_bounds = array<i64: 32, 128>}, {pipeline_mode = #tpu.pipeline_mode<synchronous>, transform_indices = @transform_2, window_bounds = array<i64: 1, 128>}, {pipeline_mode = #tpu.pipeline_mode<synchronous>, transform_indices = @transform_3, window_bounds = array<i64: 128, 128>}, {pipeline_mode = #tpu.pipeline_mode<synchronous>, transform_indices = @transform_4, window_bounds = array<i64: 1, 128>}, {pipeline_mode = #tpu.pipeline_mode<synchronous>, transform_indices = @transform_5, window_bounds = array<i64: 128, 128>}, {pipeline_mode = #tpu.pipeline_mode<synchronous>, transform_indices = @transform_6, window_bounds = array<i64: 1, 128>}, {transform_indices = @transform_7, window_bounds = array<i64: 256, 128>}]} {
    %c0 = arith.constant 0 : index
    %c0_0 = arith.constant 0 : index
    %0 = vector.load %arg1[%c0, %c0_0] : memref<256x32xf32, #tpu.memory_space<vmem>>, vector<256x32xf32>
    %c0_1 = arith.constant 0 : index
    %c0_2 = arith.constant 0 : index
    %1 = vector.load %arg2[%c0_1, %c0_2] : memref<32x128xf32, #tpu.memory_space<vmem>>, vector<32x128xf32>
    %c0_3 = arith.constant 0 : index
    %c0_4 = arith.constant 0 : index
    %2 = vector.load %arg3[%c0_3, %c0_4] : memref<1x128xf32, #tpu.memory_space<vmem>>, vector<1x128xf32>
    %cst = arith.constant dense<0.000000e+00> : vector<256x128xf32>
    %3 = tpu.matmul %0, %1, %cst {dimension_numbers = #tpu.dot_dimension_numbers<[1], [0], [0], [1], [0, 0, 1, 1], [], []>} : vector<256x32xf32>, vector<32x128xf32>, vector<256x128xf32> -> vector<256x128xf32>
    %4 = vector.broadcast %2 : vector<1x128xf32> to vector<256x128xf32>
    %5 = arith.addf %3, %4 : vector<256x128xf32>
    %6 = arith.negf %5 : vector<256x128xf32>
    %7 = math.exp %6 : vector<256x128xf32>
    %cst_5 = arith.constant 1.000000e+00 : f32
    %8 = vector.broadcast %cst_5 : f32 to vector<256x128xf32>
    %9 = arith.addf %8, %7 : vector<256x128xf32>
    %10 = arith.divf %8, %9 : vector<256x128xf32>
    %c0_6 = arith.constant 0 : index
    %c0_7 = arith.constant 0 : index
    %11 = vector.load %arg4[%c0_6, %c0_7] : memref<128x128xf32, #tpu.memory_space<vmem>>, vector<128x128xf32>
    %c0_8 = arith.constant 0 : index
    %c0_9 = arith.constant 0 : index
    %12 = vector.load %arg5[%c0_8, %c0_9] : memref<1x128xf32, #tpu.memory_space<vmem>>, vector<1x128xf32>
    %cst_10 = arith.constant dense<0.000000e+00> : vector<256x128xf32>
    %13 = tpu.matmul %10, %11, %cst_10 {dimension_numbers = #tpu.dot_dimension_numbers<[1], [0], [0], [1], [0, 0, 1, 1], [], []>} : vector<256x128xf32>, vector<128x128xf32>, vector<256x128xf32> -> vector<256x128xf32>
    %14 = vector.broadcast %12 : vector<1x128xf32> to vector<256x128xf32>
    %15 = arith.addf %13, %14 : vector<256x128xf32>
    %16 = arith.negf %15 : vector<256x128xf32>
    %17 = math.exp %16 : vector<256x128xf32>
    %cst_11 = arith.constant 1.000000e+00 : f32
    %18 = vector.broadcast %cst_11 : f32 to vector<256x128xf32>
    %19 = arith.addf %18, %17 : vector<256x128xf32>
    %20 = arith.divf %18, %19 : vector<256x128xf32>
    %c0_12 = arith.constant 0 : index
    %c0_13 = arith.constant 0 : index
    %21 = vector.load %arg6[%c0_12, %c0_13] : memref<128x128xf32, #tpu.memory_space<vmem>>, vector<128x128xf32>
    %c0_14 = arith.constant 0 : index
    %c0_15 = arith.constant 0 : index
    %22 = vector.load %arg7[%c0_14, %c0_15] : memref<1x128xf32, #tpu.memory_space<vmem>>, vector<1x128xf32>
    %cst_16 = arith.constant dense<0.000000e+00> : vector<256x128xf32>
    %23 = tpu.matmul %20, %21, %cst_16 {dimension_numbers = #tpu.dot_dimension_numbers<[1], [0], [0], [1], [0, 0, 1, 1], [], []>} : vector<256x128xf32>, vector<128x128xf32>, vector<256x128xf32> -> vector<256x128xf32>
    %24 = vector.broadcast %22 : vector<1x128xf32> to vector<256x128xf32>
    %25 = arith.addf %23, %24 : vector<256x128xf32>
    %c0_17 = arith.constant 0 : index
    %c0_18 = arith.constant 0 : index
    %26 = vector.load %arg8[%c0_17, %c0_18] : memref<256x128xf32, #tpu.memory_space<vmem>>, vector<256x128xf32>
    tpu.vector_store %arg8[%c0_17, %c0_18], %25 {strides = array<i32>} : memref<256x128xf32, #tpu.memory_space<vmem>>, vector<256x128xf32>,
    return
  }
  func.func @transform_0(%arg0: i32) -> (i32, i32) {
    %c0_i32 = arith.constant 0 : i32
    %c0_i32_0 = arith.constant 0 : i32
    return %arg0, %c0_i32 : i32, i32
  }
  func.func @transform_1(%arg0: i32) -> (i32, i32) {
    %c0_i32 = arith.constant 0 : i32
    %c0_i32_0 = arith.constant 0 : i32
    %c0_i32_1 = arith.constant 0 : i32
    return %c0_i32, %c0_i32_0 : i32, i32
  }
  func.func @transform_2(%arg0: i32) -> (i32, i32) {
    %c0_i32 = arith.constant 0 : i32
    %c0_i32_0 = arith.constant 0 : i32
    %c0_i32_1 = arith.constant 0 : i32
    return %c0_i32, %c0_i32_0 : i32, i32
  }
  func.func @transform_3(%arg0: i32) -> (i32, i32) {
    %c0_i32 = arith.constant 0 : i32
    %c0_i32_0 = arith.constant 0 : i32
    %c0_i32_1 = arith.constant 0 : i32
    return %c0_i32, %c0_i32_0 : i32, i32
  }
  func.func @transform_4(%arg0: i32) -> (i32, i32) {
    %c0_i32 = arith.constant 0 : i32
    %c0_i32_0 = arith.constant 0 : i32
    %c0_i32_1 = arith.constant 0 : i32
    return %c0_i32, %c0_i32_0 : i32, i32
  }
  func.func @transform_5(%arg0: i32) -> (i32, i32) {
    %c0_i32 = arith.constant 0 : i32
    %c0_i32_0 = arith.constant 0 : i32
    %c0_i32_1 = arith.constant 0 : i32
    return %c0_i32, %c0_i32_0 : i32, i32
  }
  func.func @transform_6(%arg0: i32) -> (i32, i32) {
    %c0_i32 = arith.constant 0 : i32
    %c0_i32_0 = arith.constant 0 : i32
    %c0_i32_1 = arith.constant 0 : i32
    return %c0_i32, %c0_i32_0 : i32, i32
  }
  func.func @transform_7(%arg0: i32) -> (i32, i32) {
    %c0_i32 = arith.constant 0 : i32
    %c0_i32_0 = arith.constant 0 : i32
    return %arg0, %c0_i32 : i32, i32
  }
}

</mosaic_0001>

<bundles_post_ra>
// kernel: _mlp_forward_impl.1
= control target key start
LH: loop header
LB: loop body
LE: loop exit
PB: predicated region body
PF: predicated region fallthrough
CT: control target
= control target key end

     0   :  { %vm69_vm0 = vcmask 261120   ;;  %s2528_s1 = inlined_call_operand.vmem [shape: f32[32,128], index: 1, kind: input, shape index: {}]   ;;  %s2529_s0 = inlined_call_operand.vmem [shape: f32[256,32], index: 0, kind: input, shape index: {}]   ;;  %s2530_s3 = inlined_call_operand.vmem [shape: f32[128,128], index: 3, kind: input, shape index: {}]   ;;  %s2531_s2 = inlined_call_operand.vmem [shape: f32[1,128], index: 2, kind: input, shape index: {}]   ;;  %s2532_s5 = inlined_call_operand.vmem [shape: f32[128,128], index: 5, kind: input, shape index: {}]   ;;  %s2533_s4 = inlined_call_operand.vmem [shape: f32[1,128], index: 4, kind: input, shape index: {}]   ;;  %s2534_s6 = inlined_call_operand.vmem [shape: f32[1,128], index: 6, kind: input, shape index: {}]   ;;  %s2535_s7 = inlined_call_operand.vmem [shape: f32[256,128], index: 7, kind: output, shape index: {}]  }
   0x1   :  { %v61_v0 = vld [vmem:[%s2528_s1 + $0x18] sm:$0xff]  ;;  %v60_v1 = vld [vmem:[%s2528_s1 + $0x10] sm:$0xff]  ;;  %v26_v2 = vld [vmem:[%s2529_s0] sm:$0xff] }
   0x2   :  { %1538 = vmatprep.subr.mxu0 %v61_v0  ;;  %1754 = vmatprep.subr.mxu1 %v61_v0  ;;  %v59_v3 = vld [vmem:[%s2528_s1 + $0x8] sm:$0xff]  ;;  %v58_v4 = vld [vmem:[%s2528_s1] sm:$0xff]  ;;  %v28_v6 = vld [vmem:[%s2529_s0 + $0x10] sm:$0xff] }
   0x3   :  { %1539 = vmatpush3.msra.mxu0 %v61_v0  ;;  %1546 = vmatprep.mubr.msk.f32.mxu0 %vm69_vm0, %v26_v2  ;;  %v27_v5 = vld [vmem:[%s2529_s0 + $0x8] sm:$0xff]  ;;  %v42_v7 = vld [vmem:[%s2529_s0 + $0x80] sm:$0xff]  ;;  %v44_v9 = vld [vmem:[%s2529_s0 + $0x90] sm:$0xff] }
   0x4   :  { %1540 = vmatprep.subr.mxu0 %v60_v1  ;;  %1758 = vmatpush3.msra.mxu1 %v61_v0  ;;  %v43_v8 = vld [vmem:[%s2529_s0 + $0x88] sm:$0xff]  ;;  %v29_v10 = vld [vmem:[%s2529_s0 + $0x18] sm:$0xff]  ;;  %v30_v11 = vld [vmem:[%s2529_s0 + $0x20] sm:$0xff] }
   0x5   :  { %1541 = vmatpush3.msra.mxu0 %v60_v1  ;;  %1755 = vmatprep.subr.mxu1 %v60_v1  ;;  %v45_v12 = vld [vmem:[%s2529_s0 + $0x98] sm:$0xff]  ;;  %v46_v13 = vld [vmem:[%s2529_s0 + $0xa0] sm:$0xff]  ;;  %v31_v14 = vld [vmem:[%s2529_s0 + $0x28] sm:$0xff] }
   0x6   :  { %1542 = vmatprep.subr.mxu0 %v59_v3  ;;  %1759 = vmatpush3.msra.mxu1 %v60_v1  ;;  %v32_v15 = vld [vmem:[%s2529_s0 + $0x30] sm:$0xff]  ;;  %v47_v16 = vld [vmem:[%s2529_s0 + $0xa8] sm:$0xff]  ;;  %v33_v18 = vld [vmem:[%s2529_s0 + $0x38] sm:$0xff] }
   0x7   :  { %1543 = vmatpush3.msra.mxu0 %v59_v3  ;;  %1756 = vmatprep.subr.mxu1 %v59_v3  ;;  %v48_v17 = vld [vmem:[%s2529_s0 + $0xb0] sm:$0xff]  ;;  %v34_v19 = vld [vmem:[%s2529_s0 + $0x40] sm:$0xff]  ;;  %v49_v20 = vld [vmem:[%s2529_s0 + $0xb8] sm:$0xff] }
   0x8   :  { %1544 = vmatprep.subr.mxu0 %v58_v4  ;;  %1760 = vmatpush3.msra.mxu1 %v59_v3  ;;  %v50_v21 = vld [vmem:[%s2529_s0 + $0xc0] sm:$0xff]  ;;  %v35_v22 = vld [vmem:[%s2529_s0 + $0x48] sm:$0xff]  ;;  %v36_v23 = vld [vmem:[%s2529_s0 + $0x50] sm:$0xff] }
   0x9   :  { %1545 = vmatpush3.msra.mxu0 %v58_v4  ;;  %1757 = vmatprep.subr.mxu1 %v58_v4  ;;  %v51_v24 = vld [vmem:[%s2529_s0 + $0xc8] sm:$0xff]  ;;  %v52_v25 = vld [vmem:[%s2529_s0 + $0xd0] sm:$0xff]  ;;  %v37_v26 = vld [vmem:[%s2529_s0 + $0x58] sm:$0xff] }
   0xa   :  { %1547 = vmatmul.mubr.msk.f32.vlgmr.msra.gmra.mxu0 %vm69_vm0, %v27_v5  ;;  %1761 = vmatpush3.msra.mxu1 %v58_v4  ;;  %v38_v27 = vld [vmem:[%s2529_s0 + $0x60] sm:$0xff]  ;;  %v53_v28 = vld [vmem:[%s2529_s0 + $0xd8] sm:$0xff]  ;;  %v39_v30 = vld [vmem:[%s2529_s0 + $0x68] sm:$0xff] }
   0xb   :  { %1549 = vmatprep.mubr.msk.f32.mxu0 %vm69_vm0, %v28_v6  ;;  %1570 = vmatprep.mubr.msk.f32.mxu1 %vm69_vm0, %v42_v7  ;;  %v54_v29 = vld [vmem:[%s2529_s0 + $0xe0] sm:$0xff]  ;;  %v40_v31 = vld [vmem:[%s2529_s0 + $0x70] sm:$0xff]  ;;  %v55_v32 = vld [vmem:[%s2529_s0 + $0xe8] sm:$0xff] }
   0xc   :  { %1571 = vmatmul.mubr.msk.f32.vlgmr.msra.gmra.mxu1 %vm69_vm0, %v43_v8  ;;  %v56_v33 = vld [vmem:[%s2529_s0 + $0xf0] sm:$0xff]  ;;  %v41_v34 = vld [vmem:[%s2529_s0 + $0x78] sm:$0xff]  ;;  %v596_v38 = vld [vmem:[%s2530_s3 + $0x68] sm:$0xff] }
   0xd   :  { %1573 = vmatprep.mubr.msk.f32.mxu1 %vm69_vm0, %v44_v9  ;;  %v57_v35 = vld [vmem:[%s2529_s0 + $0xf8] sm:$0xff]  ;;  %v597_v37 = vld [vmem:[%s2530_s3 + $0x70] sm:$0xff]  ;;  %v595_v39 = vld [vmem:[%s2530_s3 + $0x60] sm:$0xff] }
   0xe   :  { %1550 = vmatmul.mubr.msk.f32.gmra.mxu0 %vm69_vm0, %v29_v10  ;;  %v598_v36 = vld [vmem:[%s2530_s3 + $0x78] sm:$0xff]  ;;  %v593_v41 = vld [vmem:[%s2530_s3 + $0x50] sm:$0xff]  ;;  %v592_v42 = vld [vmem:[%s2530_s3 + $0x48] sm:$0xff] }
   0xf   :  { %1552 = vmatprep.mubr.msk.f32.mxu0 %vm69_vm0, %v30_v11  ;;  %1594 = vmatprep.subr.mxu1 %v598_v36  ;;  %v594_v40 = vld [vmem:[%s2530_s3 + $0x58] sm:$0xff]  ;;  %v591_v43 = vld [vmem:[%s2530_s3 + $0x40] sm:$0xff]  ;;  %v589_v45 = vld [vmem:[%s2530_s3 + $0x30] sm:$0xff] }
  0x10   :  { %1574 = vmatmul.mubr.msk.f32.gmra.mxu1 %vm69_vm0, %v45_v12  ;;  %v590_v44 = vld [vmem:[%s2530_s3 + $0x38] sm:$0xff]  ;;  %v588_v46 = vld [vmem:[%s2530_s3 + $0x28] sm:$0xff]  ;;  %v587_v47 = vld [vmem:[%s2530_s3 + $0x20] sm:$0xff] }
  0x11   :  { %1576 = vmatprep.mubr.msk.f32.mxu1 %vm69_vm0, %v46_v13  ;;  %1595 = vmatpush3.msra.mxu1 %v598_v36  ;;  %v586_v48 = vld [vmem:[%s2530_s3 + $0x18] sm:$0xff]  ;;  %v585_v49 = vld [vmem:[%s2530_s3 + $0x10] sm:$0xff]  ;;  %v584_v50 = vld [vmem:[%s2530_s3 + $0x8] sm:$0xff] }
  0x12   :  { %1553 = vmatmul.mubr.msk.f32.gmra.mxu0 %vm69_vm0, %v31_v14  ;;  %1596 = vmatprep.subr.mxu1 %v597_v37  ;;  %v583_v51 = vld [vmem:[%s2530_s3] sm:$0xff] }
  0x13   :  { %1555 = vmatprep.mubr.msk.f32.mxu0 %vm69_vm0, %v32_v15  ;;  %1597 = vmatpush3.msra.mxu1 %v597_v37  ;;  %v2249_v52 = vld [vmem:[%s2531_s2] ss:$0 sm:$0xff] }
  0x14   :  { %1577 = vmatmul.mubr.msk.f32.gmra.mxu1 %vm69_vm0, %v47_v16  ;;  %1598 = vmatprep.subr.mxu1 %v596_v38 }
  0x15   :  { %1579 = vmatprep.mubr.msk.f32.mxu1 %vm69_vm0, %v48_v17  ;;  %1599 = vmatpush3.msra.mxu1 %v596_v38 }
  0x16   :  { %1556 = vmatmul.mubr.msk.f32.gmra.mxu0 %vm69_vm0, %v33_v18  ;;  %1600 = vmatprep.subr.mxu1 %v595_v39 }
  0x17   :  { %1558 = vmatprep.mubr.msk.f32.mxu0 %vm69_vm0, %v34_v19  ;;  %1601 = vmatpush3.msra.mxu1 %v595_v39 }
  0x18   :  { %1580 = vmatmul.mubr.msk.f32.gmra.mxu1 %vm69_vm0, %v49_v20  ;;  %1602 = vmatprep.subr.mxu1 %v594_v40 }
  0x19   :  { %1582 = vmatprep.mubr.msk.f32.mxu1 %vm69_vm0, %v50_v21  ;;  %1603 = vmatpush3.msra.mxu1 %v594_v40 }
  0x1a   :  { %1559 = vmatmul.mubr.msk.f32.gmra.mxu0 %vm69_vm0, %v35_v22  ;;  %1604 = vmatprep.subr.mxu1 %v593_v41 }
  0x1b   :  { %1561 = vmatprep.mubr.msk.f32.mxu0 %vm69_vm0, %v36_v23  ;;  %1605 = vmatpush3.msra.mxu1 %v593_v41 }
  0x1c   :  { %1583 = vmatmul.mubr.msk.f32.gmra.mxu1 %vm69_vm0, %v51_v24  ;;  %1606 = vmatprep.subr.mxu1 %v592_v42 }
  0x1d   :  { %1585 = vmatprep.mubr.msk.f32.mxu1 %vm69_vm0, %v52_v25  ;;  %1607 = vmatpush3.msra.mxu1 %v592_v42 }
  0x1e   :  { %1562 = vmatmul.mubr.msk.f32.gmra.mxu0 %vm69_vm0, %v37_v26  ;;  %1608 = vmatprep.subr.mxu1 %v591_v43 }
  0x1f   :  { %1564 = vmatprep.mubr.msk.f32.mxu0 %vm69_vm0, %v38_v27  ;;  %1609 = vmatpush3.msra.mxu1 %v591_v43 }
  0x20   :  { %1586 = vmatmul.mubr.msk.f32.gmra.mxu1 %vm69_vm0, %v53_v28  ;;  %1610 = vmatprep.subr.mxu1 %v590_v44 }
  0x21   :  { %1588 = vmatprep.mubr.msk.f32.mxu1 %vm69_vm0, %v54_v29  ;;  %1611 = vmatpush3.msra.mxu1 %v590_v44 }
  0x22   :  { %1565 = vmatmul.mubr.msk.f32.gmra.mxu0 %vm69_vm0, %v39_v30  ;;  %1612 = vmatprep.subr.mxu1 %v589_v45 }
  0x23   :  { %1567 = vmatprep.mubr.msk.f32.mxu0 %vm69_vm0, %v40_v31  ;;  %1613 = vmatpush3.msra.mxu1 %v589_v45 }
  0x24   :  { %1589 = vmatmul.mubr.msk.f32.gmra.mxu1 %vm69_vm0, %v55_v32  ;;  %1614 = vmatprep.subr.mxu1 %v588_v46 }
  0x25   :  { %1591 = vmatprep.mubr.msk.f32.mxu1 %vm69_vm0, %v56_v33  ;;  %1615 = vmatpush3.msra.mxu1 %v588_v46 }
  0x26   :  { %1568 = vmatmul.mubr.msk.f32.gmra.mxu0 %vm69_vm0, %v41_v34  ;;  %1616 = vmatprep.subr.mxu1 %v587_v47 }
  0x27   :  { %1617 = vmatpush3.msra.mxu1 %v587_v47 }
  0x28   :  { %1592 = vmatmul.mubr.msk.f32.gmra.mxu1 %vm69_vm0, %v57_v35  ;;  %1618 = vmatprep.subr.mxu1 %v586_v48 }
  0x29   :  { %1619 = vmatpush3.msra.mxu1 %v586_v48 }
  0x2a   :  { %1620 = vmatprep.subr.mxu1 %v585_v49 }
  0x2b   :  { %1621 = vmatpush3.msra.mxu1 %v585_v49 }
  0x2c   :  { %1622 = vmatprep.subr.mxu1 %v584_v50 }
  0x2d   :  { %1623 = vmatpush3.msra.mxu1 %v584_v50 }
  0x2e   :  { %1624 = vmatprep.subr.mxu1 %v583_v51 }
  0x2f   :  { %1625 = vmatpush3.msra.mxu1 %v583_v51 }
  0xca   :  { %v1548_v53 = vpop.f32.mrf.mxu0 }
  0xcb   :  { %v238_v54 = vadd.f32 %v1548_v53, %v2249_v52 }
  0xcc   :  { %v232_v55 = vpop.f32.mrf.mxu0  ;;  %v1572_v56 = vpop.f32.mrf.mxu1 }
  0xcd   :  { %v1341_v57 = vmul.f32 -1.442695, %v238_v54  ;;  %v233_v58 = vadd.f32 %v2249_v52, %v232_v55  ;;  %v318_v0 = vadd.f32 %v1572_v56, %v2249_v52 }
  0xce   :  { %v1551_v59 = vpop.f32.mrf.mxu0  ;;  %v312_v60 = vpop.f32.mrf.mxu1 }
  0xcf   :  { %1762 = vpow2.f32 %v1341_v57  ;;  %v1340_v61 = vmul.f32 -1.442695, %v233_v58  ;;  %v248_v62 = vadd.f32 %v1551_v59, %v2249_v52  ;;  %v313_v5 = vadd.f32 %v2249_v52, %v312_v60 }
  0xd0   :  { %v242_v63 = vpop.f32.mrf.mxu0  ;;  %v1575_v1 = vpop.f32.mrf.mxu1  ;;  %v1357_v10 = vmul.f32 -1.442695, %v318_v0 }
  0xd1   :  { %1764 = vpow2.f32 %v1340_v61  ;;  %v1343_v2 = vmul.f32 -1.442695, %v248_v62  ;;  %v243_v3 = vadd.f32 %v2249_v52, %v242_v63  ;;  %v328_v11 = vadd.f32 %v1575_v1, %v2249_v52 }
  0xd2   :  { %v1554_v4 = vpop.f32.mrf.mxu0  ;;  %v322_v6 = vpop.f32.mrf.mxu1  ;;  %v1356_v16 = vmul.f32 -1.442695, %v313_v5 }
  0xd3   :  { %1766 = vpow2.f32 %v1343_v2  ;;  %v1342_v7 = vmul.f32 -1.442695, %v243_v3  ;;  %v258_v8 = vadd.f32 %v1554_v4, %v2249_v52  ;;  %v323_v17 = vadd.f32 %v2249_v52, %v322_v6 }
  0xd4   :  { %v252_v9 = vpop.f32.mrf.mxu0  ;;  %v2259_v12 = vpop.f32.mrf.mxu1  ;;  %v1359_v22 = vmul.f32 -1.442695, %v328_v11 }
  0xd5   :  { %1768 = vpow2.f32 %v1342_v7  ;;  %v1345_v13 = vmul.f32 -1.442695, %v258_v8  ;;  %v253_v14 = vadd.f32 %v2249_v52, %v252_v9  ;;  %v1358_v27 = vmul.f32 -1.442695, %v323_v17 }
  0xd6   :  { %v1557_v15 = vpop.f32.mrf.mxu0  ;;  %v2263_v18 = vpop.f32.mrf.mxu1  ;;  %v338_v5 = vadd.f32 %v2259_v12, %v2249_v52 }
  0xd7   :  { %1770 = vpow2.f32 %v1345_v13  ;;  %v1344_v19 = vmul.f32 -1.442695, %v253_v14  ;;  %v268_v20 = vadd.f32 %v1557_v15, %v2249_v52  ;;  %v333_v6 = vadd.f32 %v2249_v52, %v2263_v18 }
  0xd8   :  { %v262_v21 = vpop.f32.mrf.mxu0  ;;  %1772 = vpow2.f32 %v1357_v10  ;;  %v2266_v23 = vpop.f32.mrf.mxu1  ;;  %v1361_v12 = vmul.f32 -1.442695, %v338_v5 }
  0xd9   :  { %1774 = vpow2.f32 %v1344_v19  ;;  %v1347_v24 = vmul.f32 -1.442695, %v268_v20  ;;  %v263_v25 = vadd.f32 %v2249_v52, %v262_v21  ;;  %v348_v18 = vadd.f32 %v2266_v23, %v2249_v52 }
  0xda   :  { %v1560_v26 = vpop.f32.mrf.mxu0  ;;  %1776 = vpow2.f32 %v1356_v16  ;;  %v2270_v30 = vpop.f32.mrf.mxu1  ;;  %v1360_v20 = vmul.f32 -1.442695, %v333_v6 }
  0xdb   :  { %1778 = vpow2.f32 %v1347_v24  ;;  %v1346_v28 = vmul.f32 -1.442695, %v263_v25  ;;  %v278_v29 = vadd.f32 %v1560_v26, %v2249_v52 }
  0xdc   :  { %v1763_v31 = vpop.eup %1762  ;;  %v272_v32 = vpop.f32.mrf.mxu0  ;;  %1780 = vpow2.f32 %v1359_v22 }
  0xdd   :  { %v488_v33 = vadd.f32 1.0, %v1763_v31  ;;  %1782 = vpow2.f32 %v1346_v28  ;;  %v1349_v34 = vmul.f32 -1.442695, %v278_v29  ;;  %v273_v35 = vadd.f32 %v2249_v52, %v272_v32  ;;  %v2274_v41 = vpop.f32.mrf.mxu1 }
  0xde   :  { %v1765_v36 = vpop.eup %1764  ;;  %v1563_v37 = vpop.f32.mrf.mxu0  ;;  %1784 = vpow2.f32 %v1358_v27  ;;  %v1363_v28 = vmul.f32 -1.442695, %v348_v18 }
  0xdf   :  { %1786 = vrcp.f32 %v488_v33  ;;  %v487_v38 = vadd.f32 1.0, %v1765_v36  ;;  %v1348_v39 = vmul.f32 -1.442695, %v273_v35  ;;  %v288_v40 = vadd.f32 %v1563_v37, %v2249_v52  ;;  %v2278_v53 = vpop.f32.mrf.mxu1 }
  0xe0   :  { %v1767_v42 = vpop.eup %1766  ;;  %1788 = vpow2.f32 %v1349_v34  ;;  %v282_v43 = vpop.f32.mrf.mxu0 }
  0xe1   :  { %1790 = vrcp.f32 %v487_v38  ;;  %v490_v44 = vadd.f32 1.0, %v1767_v42  ;;  %v1351_v45 = vmul.f32 -1.442695, %v288_v40  ;;  %v283_v46 = vadd.f32 %v2249_v52, %v282_v43  ;;  %v2282_v2 = vpop.f32.mrf.mxu1 }
  0xe2   :  { %v1769_v47 = vpop.eup %1768  ;;  %1792 = vpow2.f32 %v1348_v39  ;;  %v1566_v48 = vpop.f32.mrf.mxu0  ;;  %v343_v40 = vadd.f32 %v2249_v52, %v2270_v30 }
  0xe3   :  { %1794 = vrcp.f32 %v490_v44  ;;  %v489_v49 = vadd.f32 1.0, %v1769_v47  ;;  %v1350_v50 = vmul.f32 -1.442695, %v283_v46  ;;  %v298_v51 = vadd.f32 %v1566_v48, %v2249_v52  ;;  %v362_v16 = vpop.f32.mrf.mxu1 }
  0xe4   :  { %v1771_v54 = vpop.eup %1770  ;;  %1796 = vpow2.f32 %v1351_v45  ;;  %v292_v55 = vpop.f32.mrf.mxu0  ;;  %v358_v45 = vadd.f32 %v2274_v41, %v2249_v52  ;;  %v1362_v30 = vmul.f32 -1.442695, %v343_v40  ;;  %v368_v41 = vadd.f32 %v2282_v2, %v2249_v52 }
  0xe5   :  { %v1773_v56 = vpop.eup %1772  ;;  %1798 = vrcp.f32 %v489_v49  ;;  %v492_v57 = vadd.f32 1.0, %v1771_v54  ;;  %v1353_v58 = vmul.f32 -1.442695, %v298_v51  ;;  %v293_v59 = vadd.f32 %v2249_v52, %v292_v55  ;;  %v2293_v25 = vpop.f32.mrf.mxu1 }
  0xe6   :  { %v1775_v60 = vpop.eup %1774  ;;  %1800 = vpow2.f32 %v1350_v50  ;;  %v1569_v61 = vpop.f32.mrf.mxu0  ;;  %v504_v31 = vadd.f32 1.0, %v1773_v56  ;;  %v353_v49 = vadd.f32 %v2249_v52, %v2278_v53  ;;  %v363_v55 = vadd.f32 %v2249_v52, %v362_v16 }
  0xe7   :  { %v1777_v62 = vpop.eup %1776  ;;  %1802 = vrcp.f32 %v492_v57  ;;  %v491_v63 = vadd.f32 1.0, %v1775_v60  ;;  %v1352_v0 = vmul.f32 -1.442695, %v293_v59  ;;  %v308_v1 = vadd.f32 %v1569_v61, %v2249_v52  ;;  %v372_v34 = vpop.f32.mrf.mxu1 }
  0xe8   :  { %v1779_v3 = vpop.eup %1778  ;;  %1804 = vpow2.f32 %v1353_v58  ;;  %v302_v4 = vpop.f32.mrf.mxu0  ;;  %v503_v37 = vadd.f32 1.0, %v1777_v62  ;;  %v1365_v57 = vmul.f32 -1.442695, %v358_v45  ;;  %v1364_v60 = vmul.f32 -1.442695, %v353_v49 }
  0xe9   :  { %v1781_v7 = vpop.eup %1780  ;;  %1806 = vrcp.f32 %v491_v63  ;;  %v494_v8 = vadd.f32 1.0, %v1779_v3  ;;  %v1355_v9 = vmul.f32 -1.442695, %v308_v1  ;;  %v303_v10 = vadd.f32 %v2249_v52, %v302_v4  ;;  %v1593_v46 = vpop.f32.mrf.mxu1 }
  0xea   :  { %v1783_v11 = vpop.eup %1782  ;;  %1808 = vpow2.f32 %v1352_v0  ;;  %v506_v39 = vadd.f32 1.0, %v1781_v7  ;;  %v373_v53 = vadd.f32 %v2249_v52, %v372_v34  ;;  %v1366_v0 = vmul.f32 -1.442695, %v363_v55 }
  0xeb   :  { %v2289_v13 = vpop.eup %1784  ;;  %1810 = vrcp.f32 %v494_v8  ;;  %v493_v14 = vadd.f32 1.0, %v1783_v11  ;;  %v1354_v15 = vmul.f32 -1.442695, %v303_v10  ;;  %v382_v58 = vpop.f32.mrf.mxu1  ;;  %v1367_v4 = vmul.f32 -1.442695, %v368_v41  ;;  %v1037_v41 = vld [vmem:[%s2532_s5 + $0x70] sm:$0xff] }
  0xec   :  { %v1787_v17 = vpop.eup %1786  ;;  %1812 = vpow2.f32 %v1355_v9  ;;  %v505_v62 = vadd.f32 1.0, %v2289_v13  ;;  %v383_v1 = vadd.f32 %v2249_v52, %v382_v58  ;;  %v378_v2 = vadd.f32 %v2293_v25, %v2249_v52  ;;  %v1036_v58 = vld [vmem:[%s2532_s5 + $0x68] sm:$0xff] }
  0xed   :  { %v1789_v19 = vpop.eup %1788  ;;  %1814 = vrcp.f32 %v493_v14  ;;  %v1368_v6 = vmul.f32 -1.442695, %v373_v53  ;;  %v388_v14 = vadd.f32 %v1593_v46, %v2249_v52  ;;  %v1033_v53 = vld [vmem:[%s2532_s5 + $0x50] sm:$0xff] }
  0xee   :  { %v1791_v21 = vpop.eup %1790  ;;  %1816 = vpow2.f32 %v1354_v15  ;;  %v496_v24 = vadd.f32 1.0, %v1789_v19  ;;  %v1370_v10 = vmul.f32 -1.442695, %v383_v1  ;;  %v1369_v13 = vmul.f32 -1.442695, %v378_v2  ;;  %v1028_v1 = vld [vmem:[%s2532_s5 + $0x28] sm:$0xff] }
  0xef   :  { %v1793_v22 = vpop.eup %1792  ;;  %1626 = vmatprep.mubr.f32.mxu1 %v1791_v21  ;;  %1818 = vpow2.f32 %v1361_v12  ;;  %v1371_v19 = vmul.f32 -1.442695, %v388_v14  ;;  %v1025_v2 = vld [vmem:[%s2532_s5 + $0x10] sm:$0xff] }
  0xf0   :  { %v1795_v26 = vpop.eup %1794  ;;  %v495_v27 = vadd.f32 1.0, %v1793_v22  ;;  %1627 = vmatmul.mubr.f32.vlgmr.msra.gmra.mxu1 %v1787_v17  ;;  %1820 = vpow2.f32 %v1360_v20 }
  0xf1   :  { %v1797_v29 = vpop.eup %1796 }
  0xf2   :  { %v1799_v32 = vpop.eup %1798  ;;  %1822 = vrcp.f32 %v495_v27  ;;  %v498_v33 = vadd.f32 1.0, %v1797_v29 }
  0xf3   :  { %v1801_v23 = vpop.eup %1800  ;;  %1824 = vrcp.f32 %v496_v24  ;;  %1629 = vmatprep.mubr.f32.mxu1 %v1799_v32 }
  0xf4   :  { %v1803_v35 = vpop.eup %1802  ;;  %v497_v36 = vadd.f32 1.0, %v1801_v23  ;;  %1826 = vpow2.f32 %v1363_v28  ;;  %1630 = vmatmul.mubr.f32.gmra.mxu1 %v1795_v26 }
  0xf5   :  { %v1805_v38 = vpop.eup %1804  ;;  %1828 = vrcp.f32 %v504_v31 }
  0xf6   :  { %v1807_v42 = vpop.eup %1806  ;;  %1830 = vrcp.f32 %v497_v36  ;;  %v500_v44 = vadd.f32 1.0, %v1805_v38 }
  0xf7   :  { %v1809_v43 = vpop.eup %1808  ;;  %1832 = vrcp.f32 %v498_v33  ;;  %1632 = vmatprep.mubr.f32.mxu1 %v1807_v42 }
  0xf8   :  { %v1811_v47 = vpop.eup %1810  ;;  %v499_v48 = vadd.f32 1.0, %v1809_v43  ;;  %1834 = vrcp.f32 %v503_v37  ;;  %1633 = vmatmul.mubr.f32.gmra.mxu1 %v1803_v35 }
  0xf9   :  { %v1813_v50 = vpop.eup %1812  ;;  %1836 = vrcp.f32 %v506_v39 }
  0xfa   :  { %v1815_v51 = vpop.eup %1814  ;;  %1838 = vrcp.f32 %v499_v48  ;;  %v502_v54 = vadd.f32 1.0, %v1813_v50 }
  0xfb   :  { %v1817_v56 = vpop.eup %1816  ;;  %1840 = vrcp.f32 %v500_v44  ;;  %1635 = vmatprep.mubr.f32.mxu1 %v1815_v51 }
  0xfc   :  { %1842 = vrcp.f32 %v502_v54  ;;  %v501_v59 = vadd.f32 1.0, %v1817_v56  ;;  %1636 = vmatmul.mubr.f32.gmra.mxu1 %v1811_v47  ;;  %v1819_v61 = vpop.eup %1818 }
  0xfd   :  { %1844 = vpow2.f32 %v1362_v30  ;;  %v1821_v63 = vpop.eup %1820  ;;  %v508_v12 = vadd.f32 1.0, %v1819_v61  ;;  %v1032_v61 = vld [vmem:[%s2532_s5 + $0x48] sm:$0xff] }
  0xfe   :  { %1846 = vrcp.f32 %v501_v59  ;;  %v507_v8 = vadd.f32 1.0, %v1821_v63  ;;  %v1035_v59 = vld [vmem:[%s2532_s5 + $0x60] sm:$0xff]  ;;  %v1030_v63 = vld [vmem:[%s2532_s5 + $0x38] sm:$0xff] }
  0xff   :  { %v1823_v3 = vpop.eup %1822  ;;  %1848 = vpow2.f32 %v1365_v57  ;;  %v1038_v57 = vld [vmem:[%s2532_s5 + $0x78] sm:$0xff] }
 0x100   :  { %v1825_v5 = vpop.eup %1824  ;;  %1850 = vpow2.f32 %v1364_v60  ;;  %1638 = vmatprep.mubr.f32.mxu1 %v1823_v3  ;;  %1674 = vmatprep.subr.mxu0 %v1038_v57  ;;  %v1034_v60 = vld [vmem:[%s2532_s5 + $0x58] sm:$0xff]  ;;  %v1027_v3 = vld [vmem:[%s2532_s5 + $0x20] sm:$0xff] }
 0x101   :  { %v1827_v7 = vpop.eup %1826  ;;  %1852 = vrcp.f32 %v505_v62  ;;  %1639 = vmatmul.mubr.f32.gmra.mxu1 %v1825_v5  ;;  %1675 = vmatpush3.msra.mxu0 %v1038_v57  ;;  %v1031_v62 = vld [vmem:[%s2532_s5 + $0x40] sm:$0xff]  ;;  %v1024_v5 = vld [vmem:[%s2532_s5 + $0x8] sm:$0xff] }
 0x102   :  { %v1829_v9 = vpop.eup %1828  ;;  %1854 = vpow2.f32 %v1366_v0  ;;  %v510_v52 = vadd.f32 1.0, %v1827_v7  ;;  %1676 = vmatprep.subr.mxu0 %v1037_v41  ;;  %v1029_v0 = vld [vmem:[%s2532_s5 + $0x30] sm:$0xff]  ;;  %v2361_v7 = vld [vmem:[%s2533_s4] ss:$0 sm:$0xff] }
 0x103   :  { %v1831_v11 = vpop.eup %1830  ;;  %1856 = vpow2.f32 %v1367_v4  ;;  %1677 = vmatpush3.msra.mxu0 %v1037_v41  ;;  %v1026_v4 = vld [vmem:[%s2532_s5 + $0x18] sm:$0xff] }
 0x104   :  { %v1833_v15 = vpop.eup %1832  ;;  %1858 = vpow2.f32 %v1368_v6  ;;  %1641 = vmatprep.mubr.f32.mxu1 %v1831_v11  ;;  %1678 = vmatprep.subr.mxu0 %v1036_v58  ;;  %v1023_v6 = vld [vmem:[%s2532_s5] sm:$0xff] }
 0x105   :  { %v1835_v16 = vpop.eup %1834  ;;  %1860 = vrcp.f32 %v507_v8  ;;  %1642 = vmatmul.mubr.f32.gmra.mxu1 %v1833_v15  ;;  %1679 = vmatpush3.msra.mxu0 %v1036_v58 }
 0x106   :  { %v1837_v17 = vpop.eup %1836  ;;  %1862 = vpow2.f32 %v1370_v10  ;;  %1680 = vmatprep.subr.mxu0 %v1035_v59 }
 0x107   :  { %v1839_v18 = vpop.eup %1838  ;;  %1864 = vpow2.f32 %v1369_v13  ;;  %1681 = vmatpush3.msra.mxu0 %v1035_v59 }
 0x108   :  { %v1841_v20 = vpop.eup %1840  ;;  %1644 = vmatprep.mubr.f32.mxu1 %v1839_v18  ;;  %1866 = vrcp.f32 %v508_v12  ;;  %1682 = vmatprep.subr.mxu0 %v1034_v60 }
 0x109   :  { %v1843_v21 = vpop.eup %1842  ;;  %1645 = vmatmul.mubr.f32.gmra.mxu1 %v1841_v20  ;;  %1868 = vpow2.f32 %v1371_v19  ;;  %1683 = vmatpush3.msra.mxu0 %v1034_v60 }
 0x10a   :  { %v1845_v22 = vpop.eup %1844  ;;  %1684 = vmatprep.subr.mxu0 %v1033_v53 }
 0x10b   :  { %v1847_v24 = vpop.eup %1846  ;;  %v509_v25 = vadd.f32 1.0, %v1845_v22  ;;  %1685 = vmatpush3.msra.mxu0 %v1033_v53 }
 0x10c   :  { %v1849_v26 = vpop.eup %1848  ;;  %1647 = vmatprep.mubr.f32.mxu1 %v1847_v24  ;;  %1686 = vmatprep.subr.mxu0 %v1032_v61 }
 0x10d   :  { %v1851_v27 = vpop.eup %1850  ;;  %1870 = vrcp.f32 %v509_v25  ;;  %1648 = vmatmul.mubr.f32.gmra.mxu1 %v1843_v21  ;;  %v512_v32 = vadd.f32 1.0, %v1849_v26  ;;  %1687 = vmatpush3.msra.mxu0 %v1032_v61 }
 0x10e   :  { %v1853_v28 = vpop.eup %1852  ;;  %v511_v29 = vadd.f32 1.0, %v1851_v27  ;;  %1650 = vmatprep.mubr.f32.mxu1 %v1835_v16  ;;  %1872 = vrcp.f32 %v510_v52  ;;  %1688 = vmatprep.subr.mxu0 %v1031_v62 }
 0x10f   :  { %v1855_v31 = vpop.eup %1854  ;;  %1689 = vmatpush3.msra.mxu0 %v1031_v62 }
 0x110   :  { %v1857_v23 = vpop.eup %1856  ;;  %1874 = vrcp.f32 %v511_v29  ;;  %v513_v33 = vadd.f32 1.0, %v1855_v31  ;;  %1690 = vmatprep.subr.mxu0 %v1030_v63 }
 0x111   :  { %v1859_v34 = vpop.eup %1858  ;;  %1651 = vmatmul.mubr.f32.gmra.mxu1 %v1829_v9  ;;  %v514_v38 = vadd.f32 1.0, %v1857_v23  ;;  %1691 = vmatpush3.msra.mxu0 %v1030_v63 }
 0x112   :  { %v1861_v35 = vpop.eup %1860  ;;  %1876 = vrcp.f32 %v513_v33  ;;  %v515_v36 = vadd.f32 1.0, %v1859_v34  ;;  %1653 = vmatprep.mubr.f32.mxu1 %v1853_v28  ;;  %1692 = vmatprep.subr.mxu0 %v1029_v0 }
 0x113   :  { %v1863_v37 = vpop.eup %1862  ;;  %1878 = vrcp.f32 %v512_v32  ;;  %1693 = vmatpush3.msra.mxu0 %v1029_v0 }
 0x114   :  { %v1865_v39 = vpop.eup %1864  ;;  %1880 = vrcp.f32 %v515_v36  ;;  %v517_v40 = vadd.f32 1.0, %v1863_v37  ;;  %1694 = vmatprep.subr.mxu0 %v1028_v1 }
 0x115   :  { %1654 = vmatmul.mubr.f32.gmra.mxu1 %v1837_v17  ;;  %v1867_v42 = vpop.eup %1866  ;;  %1882 = vrcp.f32 %v514_v38  ;;  %v516_v43 = vadd.f32 1.0, %v1865_v39  ;;  %1695 = vmatpush3.msra.mxu0 %v1028_v1 }
 0x116   :  { %1656 = vmatprep.mubr.f32.mxu1 %v1861_v35  ;;  %v1869_v44 = vpop.eup %1868  ;;  %1884 = vrcp.f32 %v517_v40  ;;  %1696 = vmatprep.subr.mxu0 %v1027_v3 }
 0x117   :  { %1886 = vrcp.f32 %v516_v43  ;;  %v518_v46 = vadd.f32 1.0, %v1869_v44  ;;  %1697 = vmatpush3.msra.mxu0 %v1027_v3 }
 0x118   :  { %1698 = vmatprep.subr.mxu0 %v1026_v4 }
 0x119   :  { %1657 = vmatmul.mubr.f32.gmra.mxu1 %v1867_v42  ;;  %1888 = vrcp.f32 %v518_v46  ;;  %1699 = vmatpush3.msra.mxu0 %v1026_v4 }
 0x11a   :  { %v1871_v45 = vpop.eup %1870  ;;  %1700 = vmatprep.subr.mxu0 %v1025_v2 }
 0x11b   :  { %1659 = vmatprep.mubr.f32.mxu1 %v1871_v45  ;;  %v1873_v47 = vpop.eup %1872  ;;  %1701 = vmatpush3.msra.mxu0 %v1025_v2 }
 0x11c   :  { %1702 = vmatprep.subr.mxu0 %v1024_v5 }
 0x11d   :  { %v1875_v48 = vpop.eup %1874  ;;  %1660 = vmatmul.mubr.f32.gmra.mxu1 %v1873_v47  ;;  %1703 = vmatpush3.msra.mxu0 %v1024_v5 }
 0x11e   :  { %1662 = vmatprep.mubr.f32.mxu1 %v1875_v48  ;;  %1704 = vmatprep.subr.mxu0 %v1023_v6 }
 0x11f   :  { %v1877_v49 = vpop.eup %1876  ;;  %1705 = vmatpush3.msra.mxu0 %v1023_v6 }
 0x120   :  { %v1879_v50 = vpop.eup %1878 }
 0x121   :  { %1663 = vmatmul.mubr.f32.gmra.mxu1 %v1879_v50  ;;  %v1881_v30 = vpop.eup %1880 }
 0x122   :  { %1665 = vmatprep.mubr.f32.mxu1 %v1877_v49  ;;  %v1883_v51 = vpop.eup %1882 }
 0x123   :  { %v1885_v54 = vpop.eup %1884 }
 0x124   :  { %v1887_v55 = vpop.eup %1886 }
 0x125   :  { %1666 = vmatmul.mubr.f32.gmra.mxu1 %v1883_v51 }
 0x126   :  { %1668 = vmatprep.mubr.f32.mxu1 %v1881_v30  ;;  %v1889_v56 = vpop.eup %1888 }
 0x129   :  { %1669 = vmatmul.mubr.f32.gmra.mxu1 %v1887_v55 }
 0x12a   :  { %1671 = vmatprep.mubr.f32.mxu1 %v1885_v54 }
 0x12d   :  { %1672 = vmatmul.mubr.f32.gmra.mxu1 %v1889_v56 }
 0x1b0   :  { %v1628_v8 = vpop.f32.mrf.mxu1 }
 0x1b1   :  { %v678_v9 = vadd.f32 %v1628_v8, %v2361_v7 }
 0x1b2   :  { %v672_v10 = vpop.f32.mrf.mxu1 }
 0x1b3   :  { %v1374_v11 = vmul.f32 -1.442695, %v678_v9  ;;  %v673_v13 = vadd.f32 %v2361_v7, %v672_v10 }
 0x1b4   :  { %v1631_v14 = vpop.f32.mrf.mxu1 }
 0x1b5   :  { %1890 = vpow2.f32 %v1374_v11  ;;  %v1373_v15 = vmul.f32 -1.442695, %v673_v13  ;;  %v688_v16 = vadd.f32 %v1631_v14, %v2361_v7 }
 0x1b6   :  { %v682_v17 = vpop.f32.mrf.mxu1 }
 0x1b7   :  { %1892 = vpow2.f32 %v1373_v15  ;;  %v1376_v12 = vmul.f32 -1.442695, %v688_v16  ;;  %v683_v18 = vadd.f32 %v2361_v7, %v682_v17 }
 0x1b8   :  { %v1634_v19 = vpop.f32.mrf.mxu1 }
 0x1b9   :  { %1894 = vpow2.f32 %v1376_v12  ;;  %v1375_v20 = vmul.f32 -1.442695, %v683_v18  ;;  %v698_v21 = vadd.f32 %v1634_v19, %v2361_v7 }
 0x1ba   :  { %v692_v22 = vpop.f32.mrf.mxu1 }
 0x1bb   :  { %1896 = vpow2.f32 %v1375_v20  ;;  %v1378_v24 = vmul.f32 -1.442695, %v698_v21  ;;  %v693_v52 = vadd.f32 %v2361_v7, %v692_v22 }
 0x1bc   :  { %v1637_v25 = vpop.f32.mrf.mxu1 }
 0x1bd   :  { %1898 = vpow2.f32 %v1378_v24  ;;  %v1377_v26 = vmul.f32 -1.442695, %v693_v52  ;;  %v708_v27 = vadd.f32 %v1637_v25, %v2361_v7 }
 0x1be   :  { %v702_v28 = vpop.f32.mrf.mxu1 }
 0x1bf   :  { %1900 = vpow2.f32 %v1377_v26  ;;  %v1380_v29 = vmul.f32 -1.442695, %v708_v27  ;;  %v703_v31 = vadd.f32 %v2361_v7, %v702_v28 }
 0x1c1   :  { %1902 = vpow2.f32 %v1380_v29  ;;  %v1379_v32 = vmul.f32 -1.442695, %v703_v31  ;;  %v1640_v23 = vpop.f32.mrf.mxu1 }
 0x1c2   :  { %v1891_v33 = vpop.eup %1890  ;;  %v718_v34 = vadd.f32 %v1640_v23, %v2361_v7 }
 0x1c3   :  { %v928_v35 = vadd.f32 1.0, %v1891_v33  ;;  %1904 = vpow2.f32 %v1379_v32  ;;  %v712_v36 = vpop.f32.mrf.mxu1 }
 0x1c4   :  { %v1893_v37 = vpop.eup %1892  ;;  %v1382_v38 = vmul.f32 -1.442695, %v718_v34  ;;  %v713_v39 = vadd.f32 %v2361_v7, %v712_v36 }
 0x1c5   :  { %1906 = vrcp.f32 %v928_v35  ;;  %v927_v40 = vadd.f32 1.0, %v1893_v37  ;;  %v1643_v42 = vpop.f32.mrf.mxu1 }
 0x1c6   :  { %v1895_v43 = vpop.eup %1894  ;;  %1908 = vpow2.f32 %v1382_v38  ;;  %v1381_v44 = vmul.f32 -1.442695, %v713_v39  ;;  %v728_v45 = vadd.f32 %v1643_v42, %v2361_v7 }
 0x1c7   :  { %1910 = vrcp.f32 %v927_v40  ;;  %v930_v46 = vadd.f32 1.0, %v1895_v43  ;;  %v722_v47 = vpop.f32.mrf.mxu1 }
 0x1c8   :  { %v1897_v48 = vpop.eup %1896  ;;  %1912 = vpow2.f32 %v1381_v44  ;;  %v1384_v49 = vmul.f32 -1.442695, %v728_v45  ;;  %v723_v50 = vadd.f32 %v2361_v7, %v722_v47 }
 0x1c9   :  { %1914 = vrcp.f32 %v930_v46  ;;  %v929_v30 = vadd.f32 1.0, %v1897_v48  ;;  %v1646_v51 = vpop.f32.mrf.mxu1 }
 0x1ca   :  { %v1899_v54 = vpop.eup %1898  ;;  %1916 = vpow2.f32 %v1384_v49  ;;  %v1383_v55 = vmul.f32 -1.442695, %v723_v50  ;;  %v738_v56 = vadd.f32 %v1646_v51, %v2361_v7 }
 0x1cb   :  { %1918 = vrcp.f32 %v929_v30  ;;  %v932_v57 = vadd.f32 1.0, %v1899_v54  ;;  %v732_v41 = vpop.f32.mrf.mxu1 }
 0x1cc   :  { %v1901_v58 = vpop.eup %1900  ;;  %1920 = vpow2.f32 %v1383_v55  ;;  %v1386_v59 = vmul.f32 -1.442695, %v738_v56  ;;  %v733_v60 = vadd.f32 %v2361_v7, %v732_v41 }
 0x1cd   :  { %1922 = vrcp.f32 %v932_v57  ;;  %v931_v53 = vadd.f32 1.0, %v1901_v58  ;;  %v1649_v61 = vpop.f32.mrf.mxu1 }
 0x1ce   :  { %v1903_v62 = vpop.eup %1902  ;;  %1924 = vpow2.f32 %v1386_v59  ;;  %v1385_v63 = vmul.f32 -1.442695, %v733_v60  ;;  %v748_v0 = vadd.f32 %v1649_v61, %v2361_v7 }
 0x1cf   :  { %1926 = vrcp.f32 %v931_v53  ;;  %v934_v1 = vadd.f32 1.0, %v1903_v62  ;;  %v742_v3 = vpop.f32.mrf.mxu1 }
 0x1d0   :  { %v1905_v4 = vpop.eup %1904  ;;  %1928 = vpow2.f32 %v1385_v63  ;;  %v1388_v2 = vmul.f32 -1.442695, %v748_v0  ;;  %v743_v5 = vadd.f32 %v2361_v7, %v742_v3 }
 0x1d1   :  { %1930 = vrcp.f32 %v934_v1  ;;  %v933_v6 = vadd.f32 1.0, %v1905_v4  ;;  %v1652_v8 = vpop.f32.mrf.mxu1 }
 0x1d2   :  { %v1907_v9 = vpop.eup %1906  ;;  %1932 = vpow2.f32 %v1388_v2  ;;  %v1387_v10 = vmul.f32 -1.442695, %v743_v5  ;;  %v758_v11 = vadd.f32 %v1652_v8, %v2361_v7 }
 0x1d3   :  { %v1909_v13 = vpop.eup %1908  ;;  %1934 = vrcp.f32 %v933_v6  ;;  %v752_v14 = vpop.f32.mrf.mxu1 }
 0x1d4   :  { %v1911_v15 = vpop.eup %1910  ;;  %v936_v16 = vadd.f32 1.0, %v1909_v13  ;;  %1936 = vpow2.f32 %v1387_v10  ;;  %v1390_v17 = vmul.f32 -1.442695, %v758_v11  ;;  %v753_v12 = vadd.f32 %v2361_v7, %v752_v14 }
 0x1d5   :  { %v1913_v18 = vpop.eup %1912  ;;  %v1655_v19 = vpop.f32.mrf.mxu1  ;;  %1706 = vmatprep.mubr.f32.mxu0 %v1911_v15 }
 0x1d6   :  { %v1915_v20 = vpop.eup %1914  ;;  %1938 = vrcp.f32 %v936_v16  ;;  %v935_v21 = vadd.f32 1.0, %v1913_v18  ;;  %v1389_v22 = vmul.f32 -1.442695, %v753_v12  ;;  %v768_v24 = vadd.f32 %v1655_v19, %v2361_v7  ;;  %1707 = vmatmul.mubr.f32.vlgmr.msra.gmra.mxu0 %v1907_v9 }
 0x1d7   :  { %v1917_v52 = vpop.eup %1916  ;;  %1940 = vpow2.f32 %v1390_v17  ;;  %v762_v25 = vpop.f32.mrf.mxu1 }
 0x1d8   :  { %v1919_v26 = vpop.eup %1918  ;;  %1942 = vrcp.f32 %v935_v21  ;;  %v938_v27 = vadd.f32 1.0, %v1917_v52  ;;  %v1392_v28 = vmul.f32 -1.442695, %v768_v24  ;;  %v763_v29 = vadd.f32 %v2361_v7, %v762_v25 }
 0x1d9   :  { %v1921_v31 = vpop.eup %1920  ;;  %1944 = vpow2.f32 %v1389_v22  ;;  %v1658_v32 = vpop.f32.mrf.mxu1  ;;  %1709 = vmatprep.mubr.f32.mxu0 %v1919_v26 }
 0x1da   :  { %v1923_v23 = vpop.eup %1922  ;;  %1946 = vrcp.f32 %v938_v27  ;;  %v937_v33 = vadd.f32 1.0, %v1921_v31  ;;  %v1391_v34 = vmul.f32 -1.442695, %v763_v29  ;;  %v778_v35 = vadd.f32 %v1658_v32, %v2361_v7  ;;  %1710 = vmatmul.mubr.f32.gmra.mxu0 %v1915_v20 }
 0x1db   :  { %v1925_v36 = vpop.eup %1924  ;;  %1948 = vpow2.f32 %v1392_v28  ;;  %v772_v37 = vpop.f32.mrf.mxu1 }
 0x1dc   :  { %v1927_v38 = vpop.eup %1926  ;;  %1950 = vrcp.f32 %v937_v33  ;;  %v940_v39 = vadd.f32 1.0, %v1925_v36  ;;  %v1394_v40 = vmul.f32 -1.442695, %v778_v35  ;;  %v773_v42 = vadd.f32 %v2361_v7, %v772_v37 }
 0x1dd   :  { %v1929_v43 = vpop.eup %1928  ;;  %1952 = vpow2.f32 %v1391_v34  ;;  %v1661_v44 = vpop.f32.mrf.mxu1  ;;  %1712 = vmatprep.mubr.f32.mxu0 %v1927_v38 }
 0x1de   :  { %v1931_v45 = vpop.eup %1930  ;;  %1954 = vrcp.f32 %v940_v39  ;;  %v939_v46 = vadd.f32 1.0, %v1929_v43  ;;  %v1393_v47 = vmul.f32 -1.442695, %v773_v42  ;;  %v788_v48 = vadd.f32 %v1661_v44, %v2361_v7  ;;  %1713 = vmatmul.mubr.f32.gmra.mxu0 %v1923_v23 }
 0x1df   :  { %v1933_v49 = vpop.eup %1932  ;;  %1956 = vpow2.f32 %v1394_v40  ;;  %v782_v50 = vpop.f32.mrf.mxu1 }
 0x1e0   :  { %v1935_v30 = vpop.eup %1934  ;;  %1958 = vrcp.f32 %v939_v46  ;;  %v942_v51 = vadd.f32 1.0, %v1933_v49  ;;  %v1396_v54 = vmul.f32 -1.442695, %v788_v48  ;;  %v783_v55 = vadd.f32 %v2361_v7, %v782_v50 }
 0x1e1   :  { %v1937_v56 = vpop.eup %1936  ;;  %1960 = vpow2.f32 %v1393_v47  ;;  %v1664_v57 = vpop.f32.mrf.mxu1  ;;  %1715 = vmatprep.mubr.f32.mxu0 %v1935_v30 }
 0x1e2   :  { %1962 = vrcp.f32 %v942_v51  ;;  %v941_v41 = vadd.f32 1.0, %v1937_v56  ;;  %v1395_v58 = vmul.f32 -1.442695, %v783_v55  ;;  %v798_v59 = vadd.f32 %v1664_v57, %v2361_v7  ;;  %1716 = vmatmul.mubr.f32.gmra.mxu0 %v1931_v45 }
 0x1e3   :  { %v1939_v60 = vpop.eup %1938  ;;  %1964 = vpow2.f32 %v1396_v54  ;;  %v792_v53 = vpop.f32.mrf.mxu1 }
 0x1e4   :  { %v1941_v61 = vpop.eup %1940  ;;  %1966 = vrcp.f32 %v941_v41  ;;  %v1398_v62 = vmul.f32 -1.442695, %v798_v59  ;;  %v793_v63 = vadd.f32 %v2361_v7, %v792_v53 }
 0x1e5   :  { %v1943_v0 = vpop.eup %1942  ;;  %v944_v1 = vadd.f32 1.0, %v1941_v61  ;;  %1968 = vpow2.f32 %v1395_v58  ;;  %v1667_v3 = vpop.f32.mrf.mxu1 }
 0x1e6   :  { %v1945_v4 = vpop.eup %1944  ;;  %1970 = vpow2.f32 %v1398_v62  ;;  %v1397_v2 = vmul.f32 -1.442695, %v793_v63  ;;  %v808_v5 = vadd.f32 %v1667_v3, %v2361_v7  ;;  %1718 = vmatprep.mubr.f32.mxu0 %v1943_v0 }
 0x1e7   :  { %v1947_v6 = vpop.eup %1946  ;;  %1972 = vrcp.f32 %v944_v1  ;;  %v943_v8 = vadd.f32 1.0, %v1945_v4  ;;  %v802_v9 = vpop.f32.mrf.mxu1  ;;  %1719 = vmatmul.mubr.f32.gmra.mxu0 %v1939_v60 }
 0x1e8   :  { %v1949_v10 = vpop.eup %1948  ;;  %1974 = vpow2.f32 %v1397_v2  ;;  %v1400_v11 = vmul.f32 -1.442695, %v808_v5  ;;  %v803_v13 = vadd.f32 %v2361_v7, %v802_v9 }
 0x1e9   :  { %v1951_v14 = vpop.eup %1950  ;;  %1976 = vrcp.f32 %v943_v8  ;;  %v946_v15 = vadd.f32 1.0, %v1949_v10  ;;  %v1670_v16 = vpop.f32.mrf.mxu1  ;;  %v2398_v10 = vld [vmem:[%s2534_s6] ss:$0 sm:$0xff] }
 0x1ea   :  { %v1953_v17 = vpop.eup %1952  ;;  %1978 = vpow2.f32 %v1400_v11  ;;  %v1399_v12 = vmul.f32 -1.442695, %v803_v13  ;;  %v818_v18 = vadd.f32 %v1670_v16, %v2361_v7  ;;  %1721 = vmatprep.mubr.f32.mxu0 %v1951_v14 }
 0x1eb   :  { %v1955_v19 = vpop.eup %1954  ;;  %1980 = vrcp.f32 %v946_v15  ;;  %v945_v20 = vadd.f32 1.0, %v1953_v17  ;;  %v812_v21 = vpop.f32.mrf.mxu1  ;;  %1722 = vmatmul.mubr.f32.gmra.mxu0 %v1947_v6 }
 0x1ec   :  { %v1957_v22 = vpop.eup %1956  ;;  %1982 = vpow2.f32 %v1399_v12  ;;  %v1402_v24 = vmul.f32 -1.442695, %v818_v18  ;;  %v813_v52 = vadd.f32 %v2361_v7, %v812_v21 }
 0x1ed   :  { %v1959_v25 = vpop.eup %1958  ;;  %1984 = vrcp.f32 %v945_v20  ;;  %v948_v26 = vadd.f32 1.0, %v1957_v22  ;;  %v1673_v27 = vpop.f32.mrf.mxu1 }
 0x1ee   :  { %v1961_v28 = vpop.eup %1960  ;;  %1986 = vpow2.f32 %v1402_v24  ;;  %v1401_v29 = vmul.f32 -1.442695, %v813_v52  ;;  %v828_v31 = vadd.f32 %v1673_v27, %v2361_v7  ;;  %1724 = vmatprep.mubr.f32.mxu0 %v1959_v25 }
 0x1ef   :  { %v1963_v32 = vpop.eup %1962  ;;  %1988 = vrcp.f32 %v948_v26  ;;  %v947_v23 = vadd.f32 1.0, %v1961_v28  ;;  %v822_v33 = vpop.f32.mrf.mxu1  ;;  %1725 = vmatmul.mubr.f32.gmra.mxu0 %v1955_v19 }
 0x1f0   :  { %v1965_v34 = vpop.eup %1964  ;;  %1990 = vpow2.f32 %v1401_v29  ;;  %v1404_v35 = vmul.f32 -1.442695, %v828_v31  ;;  %v823_v36 = vadd.f32 %v2361_v7, %v822_v33 }
 0x1f1   :  { %v1967_v37 = vpop.eup %1966  ;;  %1992 = vrcp.f32 %v947_v23  ;;  %v950_v39 = vadd.f32 1.0, %v1965_v34 }
 0x1f2   :  { %v1969_v38 = vpop.eup %1968  ;;  %1994 = vpow2.f32 %v1404_v35  ;;  %v1403_v40 = vmul.f32 -1.442695, %v823_v36  ;;  %1727 = vmatprep.mubr.f32.mxu0 %v1967_v37 }
 0x1f3   :  { %v1971_v42 = vpop.eup %1970  ;;  %v949_v43 = vadd.f32 1.0, %v1969_v38  ;;  %1728 = vmatmul.mubr.f32.gmra.mxu0 %v1963_v32 }
 0x1f4   :  { %v1973_v44 = vpop.eup %1972  ;;  %1996 = vpow2.f32 %v1403_v40  ;;  %v952_v47 = vadd.f32 1.0, %v1971_v42 }
 0x1f5   :  { %v1975_v45 = vpop.eup %1974  ;;  %1998 = vrcp.f32 %v949_v43 }
 0x1f6   :  { %v1977_v46 = vpop.eup %1976  ;;  %2000 = vrcp.f32 %v950_v39  ;;  %v951_v48 = vadd.f32 1.0, %v1975_v45 }
 0x1f7   :  { %v1979_v49 = vpop.eup %1978  ;;  %1730 = vmatprep.mubr.f32.mxu0 %v1977_v46 }
 0x1f8   :  { %v1981_v7 = vpop.eup %1980  ;;  %2002 = vrcp.f32 %v951_v48  ;;  %1731 = vmatmul.mubr.f32.gmra.mxu0 %v1973_v44  ;;  %v954_v51 = vadd.f32 1.0, %v1979_v49 }
 0x1f9   :  { %v1983_v50 = vpop.eup %1982  ;;  %2004 = vrcp.f32 %v952_v47 }
 0x1fa   :  { %v1985_v30 = vpop.eup %1984  ;;  %v953_v54 = vadd.f32 1.0, %v1983_v50 }
 0x1fb   :  { %v1987_v55 = vpop.eup %1986  ;;  %1733 = vmatprep.mubr.f32.mxu0 %v1985_v30 }
 0x1fc   :  { %v1989_v56 = vpop.eup %1988  ;;  %2006 = vrcp.f32 %v953_v54  ;;  %1734 = vmatmul.mubr.f32.gmra.mxu0 %v1981_v7  ;;  %v956_v58 = vadd.f32 1.0, %v1987_v55 }
 0x1fd   :  { %v1991_v57 = vpop.eup %1990  ;;  %2008 = vrcp.f32 %v954_v51 }
 0x1fe   :  { %v1993_v41 = vpop.eup %1992  ;;  %v955_v59 = vadd.f32 1.0, %v1991_v57 }
 0x1ff   :  { %v1995_v60 = vpop.eup %1994  ;;  %1736 = vmatprep.mubr.f32.mxu0 %v1993_v41 }
 0x200   :  { %2010 = vrcp.f32 %v955_v59  ;;  %1737 = vmatmul.mubr.f32.gmra.mxu0 %v1989_v56  ;;  %v958_v62 = vadd.f32 1.0, %v1995_v60 }
 0x201   :  { %v1997_v53 = vpop.eup %1996  ;;  %2012 = vrcp.f32 %v956_v58 }
 0x202   :  { %v1999_v61 = vpop.eup %1998  ;;  %v957_v63 = vadd.f32 1.0, %v1997_v53 }
 0x203   :  { %v2001_v0 = vpop.eup %2000  ;;  %1739 = vmatprep.mubr.f32.mxu0 %v1999_v61 }
 0x204   :  { %2014 = vrcp.f32 %v957_v63  ;;  %1740 = vmatmul.mubr.f32.gmra.mxu0 %v2001_v0 }
 0x205   :  { %v2003_v1 = vpop.eup %2002  ;;  %2016 = vrcp.f32 %v958_v62 }
 0x206   :  { %1742 = vmatprep.mubr.f32.mxu0 %v2003_v1  ;;  %v2005_v3 = vpop.eup %2004 }
 0x208   :  { %1743 = vmatmul.mubr.f32.gmra.mxu0 %v2005_v3 }
 0x209   :  { %v2007_v4 = vpop.eup %2006 }
 0x20a   :  { %1745 = vmatprep.mubr.f32.mxu0 %v2007_v4  ;;  %v2009_v2 = vpop.eup %2008 }
 0x20c   :  { %1746 = vmatmul.mubr.f32.gmra.mxu0 %v2009_v2 }
 0x20d   :  { %v2011_v5 = vpop.eup %2010 }
 0x20e   :  { %1748 = vmatprep.mubr.f32.mxu0 %v2011_v5  ;;  %v2013_v6 = vpop.eup %2012 }
 0x210   :  { %1749 = vmatmul.mubr.f32.gmra.mxu0 %v2013_v6 }
 0x211   :  { %v2015_v8 = vpop.eup %2014 }
 0x212   :  { %1751 = vmatprep.mubr.f32.mxu0 %v2015_v8  ;;  %v2017_v9 = vpop.eup %2016 }
 0x214   :  { %1752 = vmatmul.mubr.f32.gmra.mxu0 %v2017_v9 }
 0x296   :  { %v1708_v11 = vpop.f32.mrf.mxu0 }
 0x297   :  { %v1118_v13 = vadd.f32 %v1708_v11, %v2398_v10 }
 0x298   :  { %v1112_v14 = vpop.f32.mrf.mxu0 }
 0x299   :  { %1272 = vst [vmem:[%s2535_s7 + $0x8] sm:$0xff] %v1118_v13  ;;  %v1113_v15 = vadd.f32 %v2398_v10, %v1112_v14 }
 0x29a   :  { %v1711_v16 = vpop.f32.mrf.mxu0 }
 0x29b   :  { %1271 = vst [vmem:[%s2535_s7] sm:$0xff] %v1113_v15  ;;  %v1128_v17 = vadd.f32 %v1711_v16, %v2398_v10 }
 0x29c   :  { %v1122_v12 = vpop.f32.mrf.mxu0 }
 0x29d   :  { %1274 = vst [vmem:[%s2535_s7 + $0x18] sm:$0xff] %v1128_v17  ;;  %v1123_v18 = vadd.f32 %v2398_v10, %v1122_v12 }
 0x29e   :  { %v1714_v19 = vpop.f32.mrf.mxu0 }
 0x29f   :  { %1273 = vst [vmem:[%s2535_s7 + $0x10] sm:$0xff] %v1123_v18  ;;  %v1138_v20 = vadd.f32 %v1714_v19, %v2398_v10 }
 0x2a0   :  { %v1132_v21 = vpop.f32.mrf.mxu0 }
 0x2a1   :  { %1276 = vst [vmem:[%s2535_s7 + $0x28] sm:$0xff] %v1138_v20  ;;  %v1133_v22 = vadd.f32 %v2398_v10, %v1132_v21 }
 0x2a2   :  { %v1717_v24 = vpop.f32.mrf.mxu0 }
 0x2a3   :  { %1275 = vst [vmem:[%s2535_s7 + $0x20] sm:$0xff] %v1133_v22  ;;  %v1148_v52 = vadd.f32 %v1717_v24, %v2398_v10 }
 0x2a4   :  { %v1142_v25 = vpop.f32.mrf.mxu0 }
 0x2a5   :  { %1278 = vst [vmem:[%s2535_s7 + $0x38] sm:$0xff] %v1148_v52  ;;  %v1143_v26 = vadd.f32 %v2398_v10, %v1142_v25 }
 0x2a7   :  { %1277 = vst [vmem:[%s2535_s7 + $0x30] sm:$0xff] %v1143_v26  ;;  %v1720_v27 = vpop.f32.mrf.mxu0 }
 0x2a8   :  { %v1158_v28 = vadd.f32 %v1720_v27, %v2398_v10 }
 0x2a9   :  { %v1152_v29 = vpop.f32.mrf.mxu0 }
 0x2aa   :  { %1280 = vst [vmem:[%s2535_s7 + $0x48] sm:$0xff] %v1158_v28  ;;  %v1153_v31 = vadd.f32 %v2398_v10, %v1152_v29 }
 0x2ab   :  { %v1723_v32 = vpop.f32.mrf.mxu0 }
 0x2ac   :  { %1279 = vst [vmem:[%s2535_s7 + $0x40] sm:$0xff] %v1153_v31  ;;  %v1168_v23 = vadd.f32 %v1723_v32, %v2398_v10 }
 0x2ad   :  { %v1162_v33 = vpop.f32.mrf.mxu0 }
 0x2ae   :  { %1282 = vst [vmem:[%s2535_s7 + $0x58] sm:$0xff] %v1168_v23  ;;  %v1163_v34 = vadd.f32 %v2398_v10, %v1162_v33 }
 0x2af   :  { %v1726_v35 = vpop.f32.mrf.mxu0 }
 0x2b0   :  { %1281 = vst [vmem:[%s2535_s7 + $0x50] sm:$0xff] %v1163_v34  ;;  %v1178_v36 = vadd.f32 %v1726_v35, %v2398_v10 }
 0x2b1   :  { %v1172_v37 = vpop.f32.mrf.mxu0 }
 0x2b2   :  { %1284 = vst [vmem:[%s2535_s7 + $0x68] sm:$0xff] %v1178_v36  ;;  %v1173_v38 = vadd.f32 %v2398_v10, %v1172_v37 }
 0x2b3   :  { %v1729_v39 = vpop.f32.mrf.mxu0 }
 0x2b4   :  { %1283 = vst [vmem:[%s2535_s7 + $0x60] sm:$0xff] %v1173_v38  ;;  %v1188_v40 = vadd.f32 %v1729_v39, %v2398_v10 }
 0x2b5   :  { %v1182_v42 = vpop.f32.mrf.mxu0 }
 0x2b6   :  { %1286 = vst [vmem:[%s2535_s7 + $0x78] sm:$0xff] %v1188_v40  ;;  %v1183_v43 = vadd.f32 %v2398_v10, %v1182_v42 }
 0x2b8   :  { %1285 = vst [vmem:[%s2535_s7 + $0x70] sm:$0xff] %v1183_v43  ;;  %v1732_v44 = vpop.f32.mrf.mxu0 }
 0x2b9   :  { %v1198_v45 = vadd.f32 %v1732_v44, %v2398_v10 }
 0x2ba   :  { %v1192_v46 = vpop.f32.mrf.mxu0 }
 0x2bb   :  { %1288 = vst [vmem:[%s2535_s7 + $0x88] sm:$0xff] %v1198_v45  ;;  %v1193_v47 = vadd.f32 %v2398_v10, %v1192_v46 }
 0x2bc   :  { %v1735_v48 = vpop.f32.mrf.mxu0 }
 0x2bd   :  { %1287 = vst [vmem:[%s2535_s7 + $0x80] sm:$0xff] %v1193_v47  ;;  %v1208_v49 = vadd.f32 %v1735_v48, %v2398_v10 }
 0x2be   :  { %v1202_v7 = vpop.f32.mrf.mxu0 }
 0x2bf   :  { %1290 = vst [vmem:[%s2535_s7 + $0x98] sm:$0xff] %v1208_v49  ;;  %v1203_v50 = vadd.f32 %v2398_v10, %v1202_v7 }
 0x2c0   :  { %v1738_v30 = vpop.f32.mrf.mxu0 }
 0x2c1   :  { %1289 = vst [vmem:[%s2535_s7 + $0x90] sm:$0xff] %v1203_v50  ;;  %v1218_v51 = vadd.f32 %v1738_v30, %v2398_v10 }
 0x2c2   :  { %v1212_v54 = vpop.f32.mrf.mxu0 }
 0x2c3   :  { %1292 = vst [vmem:[%s2535_s7 + $0xa8] sm:$0xff] %v1218_v51  ;;  %v1213_v55 = vadd.f32 %v2398_v10, %v1212_v54 }
 0x2c4   :  { %v1741_v56 = vpop.f32.mrf.mxu0 }
 0x2c5   :  { %1291 = vst [vmem:[%s2535_s7 + $0xa0] sm:$0xff] %v1213_v55  ;;  %v1228_v57 = vadd.f32 %v1741_v56, %v2398_v10 }
 0x2c6   :  { %v1222_v41 = vpop.f32.mrf.mxu0 }
 0x2c7   :  { %1294 = vst [vmem:[%s2535_s7 + $0xb8] sm:$0xff] %v1228_v57  ;;  %v1223_v58 = vadd.f32 %v2398_v10, %v1222_v41 }
 0x2c8   :  { %v1744_v59 = vpop.f32.mrf.mxu0 }
 0x2c9   :  { %1293 = vst [vmem:[%s2535_s7 + $0xb0] sm:$0xff] %v1223_v58  ;;  %v1238_v60 = vadd.f32 %v1744_v59, %v2398_v10 }
 0x2ca   :  { %v1232_v53 = vpop.f32.mrf.mxu0 }
 0x2cb   :  { %1296 = vst [vmem:[%s2535_s7 + $0xc8] sm:$0xff] %v1238_v60  ;;  %v1233_v61 = vadd.f32 %v2398_v10, %v1232_v53 }
 0x2cc   :  { %v1747_v62 = vpop.f32.mrf.mxu0 }
 0x2cd   :  { %1295 = vst [vmem:[%s2535_s7 + $0xc0] sm:$0xff] %v1233_v61  ;;  %v1248_v63 = vadd.f32 %v1747_v62, %v2398_v10 }
 0x2ce   :  { %v1242_v0 = vpop.f32.mrf.mxu0 }
 0x2cf   :  { %1298 = vst [vmem:[%s2535_s7 + $0xd8] sm:$0xff] %v1248_v63  ;;  %v1243_v1 = vadd.f32 %v2398_v10, %v1242_v0 }
 0x2d0   :  { %v1750_v3 = vpop.f32.mrf.mxu0 }
 0x2d1   :  { %1297 = vst [vmem:[%s2535_s7 + $0xd0] sm:$0xff] %v1243_v1  ;;  %v1258_v4 = vadd.f32 %v1750_v3, %v2398_v10 }
 0x2d2   :  { %v1252_v2 = vpop.f32.mrf.mxu0 }
 0x2d3   :  { %1300 = vst [vmem:[%s2535_s7 + $0xe8] sm:$0xff] %v1258_v4  ;;  %v1253_v5 = vadd.f32 %v2398_v10, %v1252_v2 }
 0x2d4   :  { %v1753_v6 = vpop.f32.mrf.mxu0 }
 0x2d5   :  { %1299 = vst [vmem:[%s2535_s7 + $0xe0] sm:$0xff] %v1253_v5  ;;  %v1268_v8 = vadd.f32 %v1753_v6, %v2398_v10 }
 0x2d6   :  { %v1262_v9 = vpop.f32.mrf.mxu0 }
 0x2d7   :  { %1302 = vst [vmem:[%s2535_s7 + $0xf8] sm:$0xff] %v1268_v8  ;;  %v1263_v11 = vadd.f32 %v2398_v10, %v1262_v9 }
 0x2d9   :  { %1301 = vst [vmem:[%s2535_s7 + $0xf0] sm:$0xff] %v1263_v11 }

</bundles_post_ra>
